<compile_context>
chip_gen: v5e
topology: v5e:2x2
jax: 0.10.0
libtpu: 0.0.40
codegen_flags: <defaults>
</compile_context>

<pallas_src>
import functools

import jax
import jax.numpy as jnp
from jax import lax
from jax.experimental import pallas as pl
from jax.experimental.pallas import tpu as pltpu


def _round_up(n, m):
    return ((n + m - 1) // m) * m


def _dqn_kernel(x_ref, w_ref, b_ref, q_ref, *, num_actions, in_features):
    """Fused 3-layer MLP + greedy-action fold on one VMEM-resident batch tile.

    x_ref: [TB, F] f32        (raw input, cast to bf16 in-register)
    w_ref: [3, D, D] bf16     (fc1 rows beyond F are zero padding, unused)
    b_ref: [3, 1, D] f32
    q_ref: [TB, D] bf16       (lanes [0, A) = Q values, lane D-1 = greedy action)
    """
    x = x_ref[...].astype(jnp.bfloat16)

    # fc1 + relu: only the first F rows of the padded weight block participate.
    h = jnp.dot(x, w_ref[0, :in_features, :],
                preferred_element_type=jnp.float32) + b_ref[0]
    h = jnp.maximum(h, 0.0)
    # fc2 + relu
    h = jnp.dot(h.astype(jnp.bfloat16), w_ref[1],
                preferred_element_type=jnp.float32) + b_ref[1]
    h = jnp.maximum(h, 0.0)
    # fc3 (no activation)
    q = jnp.dot(h.astype(jnp.bfloat16), w_ref[2],
                preferred_element_type=jnp.float32) + b_ref[2]

    # Round once to the output dtype and derive the fused greedy action from
    # the SAME rounded values, so action == argmax(stored Q) always holds.
    qf = q.astype(jnp.bfloat16).astype(jnp.float32)

    lane = lax.broadcasted_iota(jnp.int32, qf.shape, 1)
    valid = lane < num_actions
    q_masked = jnp.where(valid, qf, -jnp.inf)
    q_max = jnp.max(q_masked, axis=-1, keepdims=True)
    # First-max tie-breaking (same as jnp.argmax). Invalid lanes are -inf so
    # they can never equal the max; no extra mask needed.
    first_max = jnp.where(q_masked == q_max, lane, jnp.int32(2 ** 30))
    act = jnp.min(first_max, axis=-1, keepdims=True)            # [TB, 1] int32

    # Fold the action into the last padded lane -> single lane-dense output.
    d = qf.shape[1]
    q_out = jnp.where(lane == d - 1, act.astype(jnp.float32), qf)
    q_ref[...] = q_out.astype(q_ref.dtype)


def pack_dqn_params(params, *, dim):
    """Pack (w1,b1,w2,b2,w3,b3) into one bf16 weight cube and one f32 bias slab.

    Weights are zero-padded to [dim, dim]; biases to [1, dim]. Zero padding
    keeps the math identical (zero rows/cols contribute nothing, ReLU(0)=0).
    """
    w1, b1, w2, b2, w3, b3 = params
    D = dim

    def pad_w(w):
        out = jnp.zeros((D, D), jnp.bfloat16)
        return out.at[: w.shape[0], : w.shape[1]].set(w.astype(jnp.bfloat16))

    def pad_b(b):
        out = jnp.zeros((1, D), jnp.float32)
        return out.at[:, : b.shape[-1]].set(b.reshape(1, -1).astype(jnp.float32))

    w_packed = jnp.stack([pad_w(w1), pad_w(w2), pad_w(w3)], axis=0)   # [3, D, D]
    b_packed = jnp.stack([pad_b(b1), pad_b(b2), pad_b(b3)], axis=0)   # [3, 1, D]
    return w_packed, b_packed


@functools.partial(jax.jit, static_argnames=("num_actions", "block_batch"))
def dqn_forward(x, w_packed, b_packed, *, num_actions, block_batch=1024):
    """Returns (q_values [B, num_actions] f32, greedy_actions [B] int32)."""
    B, F = x.shape
    D = w_packed.shape[-1]
    assert num_actions < D, "need one spare padded lane for the fused action"
    assert F <= D

    # Batch tiling. Small batches run in a single grid step; large replay
    # batches are tiled with weights VMEM-resident, and the grid length is
    # rounded up to an even count so v7x's two TensorCores stay balanced.
    if B <= block_batch:
        tb = _round_up(max(B, 1), 16)
    else:
        n_blocks = pl.cdiv(B, block_batch)
        n_blocks += n_blocks % 2
        tb = _round_up(pl.cdiv(B, n_blocks), 16)
    b_pad = _round_up(B, tb)

    # No lane padding / dtype cast on the host side: the kernel absorbs both.
    # Only pad the batch axis, and only when it doesn't divide into tiles.
    x_in = x if b_pad == B else jnp.pad(x, ((0, b_pad - B), (0, 0)))

    kernel = functools.partial(_dqn_kernel, num_actions=num_actions,
                               in_features=F)

    q_pad = pl.pallas_call(
        kernel,
        out_shape=jax.ShapeDtypeStruct((b_pad, D), jnp.bfloat16),
        grid=(b_pad // tb,),
        in_specs=[
            pl.BlockSpec((tb, F), lambda i: (i, 0)),         # x: tiled over batch
            # Constant index_map -> weights/biases stay VMEM-resident; Pallas
            # doesn't re-DMA a block whose index is unchanged between steps.
            pl.BlockSpec((3, D, D), lambda i: (0, 0, 0)),
            pl.BlockSpec((3, 1, D), lambda i: (0, 0, 0)),
        ],
        out_specs=pl.BlockSpec((tb, D), lambda i: (i, 0)),   # lane-dense bf16 slab
        compiler_params=pltpu.CompilerParams(
            dimension_semantics=("parallel",),               # shards across v7x's 2 TCs
            vmem_limit_bytes=32 * 1024 * 1024,
        ),
    )(x_in, w_packed, b_packed)

    q = q_pad[:B, :num_actions].astype(jnp.float32)          # tiny slice/cast
    act = q_pad[:B, D - 1].astype(jnp.int32)                 # exact small ints in bf16
    return q, act


def init_dqn_params(key, input_size, output_size, hidden=64):
    """Mimics PyTorch nn.Linear default init (U[-1/sqrt(fan_in), 1/sqrt(fan_in)]).

    Weights stored transposed relative to PyTorch: [in_features, out_features].
    """
    keys = jax.random.split(key, 6)

    def linear(kw, kb, fan_in, fan_out):
        bound = 1.0 / jnp.sqrt(jnp.float32(fan_in))
        w = jax.random.uniform(kw, (fan_in, fan_out), jnp.float32, -bound, bound)
        b = jax.random.uniform(kb, (1, fan_out), jnp.float32, -bound, bound)
        return w, b

    w1, b1 = linear(keys[0], keys[1], input_size, hidden)
    w2, b2 = linear(keys[2], keys[3], hidden, hidden)
    w3, b3 = linear(keys[4], keys[5], hidden, output_size)
    return (w1, b1, w2, b2, w3, b3)


def dqn_reference(x, params):
    """Plain-JAX f32 reference matching PyTorch forward semantics."""
    w1, b1, w2, b2, w3, b3 = params
    h = jnp.maximum(x @ w1 + b1, 0.0)
    h = jnp.maximum(h @ w2 + b2, 0.0)
    return h @ w3 + b3


if __name__ == "__main__":
    key = jax.random.PRNGKey(0)
    k_param, k_x = jax.random.split(key)

    batch = 8          # small batch of states
    input_size = 16    # state dim
    output_size = 4    # number of actions
    hidden = 64

    params = init_dqn_params(k_param, input_size, output_size, hidden=hidden)
    D = max(128, _round_up(max(input_size, hidden, output_size), 128))
    w_packed, b_packed = pack_dqn_params(params, dim=D)

    x = jax.random.normal(k_x, (batch, input_size), jnp.float32)

    q, act = dqn_forward(x, w_packed, b_packed, num_actions=output_size)
    q, act = jax.block_until_ready((q, act))

    ref = dqn_reference(x, params)
    assert q.shape == (batch, output_size)
    assert act.shape == (batch,)
    # bf16 weights/activations + bf16 Q writeback vs f32 reference.
    assert jnp.allclose(q, ref, atol=3e-2, rtol=3e-2), "Pallas Q-values mismatch vs reference"
    # Fused greedy action must match argmax of the returned Q block.
    assert jnp.array_equal(act, jnp.argmax(q, axis=-1).astype(act.dtype)), "fused argmax mismatch"

    # TODO(synk): TD-target / Huber loss / replay buffer / epsilon-greedy are
    # host-side training logic in the original script, not DQN.forward; an
    # action-only kernel variant (skipping the Q writeback on the acting path)
    # is a further output-byte win left as a follow-up.

    print("KERNEL_OK")
</pallas_src>

<mosaic_0001>
module attributes {stable_mosaic.version = 11 : i64} {
  func.func @_dqn_kernel(%arg0: i32, %arg1: memref<16x16xf32, #tpu.memory_space<vmem>>, %arg2: memref<3x128x128xbf16, #tpu.memory_space<vmem>>, %arg3: memref<3x1x128xf32, #tpu.memory_space<vmem>>, %arg4: memref<16x128xbf16, #tpu.memory_space<vmem>>) attributes {dimension_semantics = [#tpu.dimension_semantics<parallel>], iteration_bounds = array<i64: 1>, scalar_prefetch = 0 : i64, scratch_operands = 0 : i64, tpu.core_type = #tpu.core_type<tc>, window_params = [{transform_indices = @transform_0, window_bounds = array<i64: 16, 16>}, {pipeline_mode = #tpu.pipeline_mode<synchronous>, transform_indices = @transform_1, window_bounds = array<i64: 3, 128, 128>}, {pipeline_mode = #tpu.pipeline_mode<synchronous>, transform_indices = @transform_2, window_bounds = array<i64: 3, 1, 128>}, {transform_indices = @transform_3, window_bounds = array<i64: 16, 128>}]} {
    %c0 = arith.constant 0 : index
    %c0_0 = arith.constant 0 : index
    %0 = vector.load %arg1[%c0, %c0_0] : memref<16x16xf32, #tpu.memory_space<vmem>>, vector<16x16xf32>
    %1 = arith.truncf %0 : vector<16x16xf32> to vector<16x16xbf16>
    %c0_1 = arith.constant 0 : index
    %c0_2 = arith.constant 0 : index
    %c0_3 = arith.constant 0 : index
    %2 = vector.load %arg2[%c0_1, %c0_2, %c0_3] : memref<3x128x128xbf16, #tpu.memory_space<vmem>>, vector<1x16x128xbf16>
    %3 = vector.shape_cast %2 : vector<1x16x128xbf16> to vector<16x128xbf16>
    %cst = arith.constant dense<0.000000e+00> : vector<16x128xf32>
    %4 = tpu.matmul %1, %3, %cst {dimension_numbers = #tpu.dot_dimension_numbers<[1], [0], [0], [1], [0, 0, 1, 1], [], []>} : vector<16x16xbf16>, vector<16x128xbf16>, vector<16x128xf32> -> vector<16x128xf32>
    %c0_4 = arith.constant 0 : index
    %c0_5 = arith.constant 0 : index
    %c0_6 = arith.constant 0 : index
    %5 = vector.load %arg3[%c0_4, %c0_5, %c0_6] : memref<3x1x128xf32, #tpu.memory_space<vmem>>, vector<1x1x128xf32>
    %6 = vector.shape_cast %5 : vector<1x1x128xf32> to vector<1x128xf32>
    %7 = vector.broadcast %6 : vector<1x128xf32> to vector<16x128xf32>
    %8 = arith.addf %4, %7 : vector<16x128xf32>
    %cst_7 = arith.constant 0.000000e+00 : f32
    %9 = vector.broadcast %cst_7 : f32 to vector<16x128xf32>
    %10 = arith.maximumf %8, %9 : vector<16x128xf32>
    %11 = arith.truncf %10 : vector<16x128xf32> to vector<16x128xbf16>
    %c1 = arith.constant 1 : index
    %c0_8 = arith.constant 0 : index
    %c0_9 = arith.constant 0 : index
    %12 = vector.load %arg2[%c1, %c0_8, %c0_9] : memref<3x128x128xbf16, #tpu.memory_space<vmem>>, vector<1x128x128xbf16>
    %13 = vector.shape_cast %12 : vector<1x128x128xbf16> to vector<128x128xbf16>
    %cst_10 = arith.constant dense<0.000000e+00> : vector<16x128xf32>
    %14 = tpu.matmul %11, %13, %cst_10 {dimension_numbers = #tpu.dot_dimension_numbers<[1], [0], [0], [1], [0, 0, 1, 1], [], []>} : vector<16x128xbf16>, vector<128x128xbf16>, vector<16x128xf32> -> vector<16x128xf32>
    %c1_11 = arith.constant 1 : index
    %c0_12 = arith.constant 0 : index
    %c0_13 = arith.constant 0 : index
    %15 = vector.load %arg3[%c1_11, %c0_12, %c0_13] : memref<3x1x128xf32, #tpu.memory_space<vmem>>, vector<1x1x128xf32>
    %16 = vector.shape_cast %15 : vector<1x1x128xf32> to vector<1x128xf32>
    %17 = vector.broadcast %16 : vector<1x128xf32> to vector<16x128xf32>
    %18 = arith.addf %14, %17 : vector<16x128xf32>
    %cst_14 = arith.constant 0.000000e+00 : f32
    %19 = vector.broadcast %cst_14 : f32 to vector<16x128xf32>
    %20 = arith.maximumf %18, %19 : vector<16x128xf32>
    %21 = arith.truncf %20 : vector<16x128xf32> to vector<16x128xbf16>
    %c2 = arith.constant 2 : index
    %c0_15 = arith.constant 0 : index
    %c0_16 = arith.constant 0 : index
    %22 = vector.load %arg2[%c2, %c0_15, %c0_16] : memref<3x128x128xbf16, #tpu.memory_space<vmem>>, vector<1x128x128xbf16>
    %23 = vector.shape_cast %22 : vector<1x128x128xbf16> to vector<128x128xbf16>
    %cst_17 = arith.constant dense<0.000000e+00> : vector<16x128xf32>
    %24 = tpu.matmul %21, %23, %cst_17 {dimension_numbers = #tpu.dot_dimension_numbers<[1], [0], [0], [1], [0, 0, 1, 1], [], []>} : vector<16x128xbf16>, vector<128x128xbf16>, vector<16x128xf32> -> vector<16x128xf32>
    %c2_18 = arith.constant 2 : index
    %c0_19 = arith.constant 0 : index
    %c0_20 = arith.constant 0 : index
    %25 = vector.load %arg3[%c2_18, %c0_19, %c0_20] : memref<3x1x128xf32, #tpu.memory_space<vmem>>, vector<1x1x128xf32>
    %26 = vector.shape_cast %25 : vector<1x1x128xf32> to vector<1x128xf32>
    %27 = vector.broadcast %26 : vector<1x128xf32> to vector<16x128xf32>
    %28 = arith.addf %24, %27 : vector<16x128xf32>
    %29 = arith.truncf %28 : vector<16x128xf32> to vector<16x128xbf16>
    %30 = arith.extf %29 : vector<16x128xbf16> to vector<16x128xf32>
    %31 = tpu.iota {dimensions = array<i32: 1>} : vector<16x128xi32>
    %c4_i32 = arith.constant 4 : i32
    %32 = vector.broadcast %c4_i32 : i32 to vector<16x128xi32>
    %33 = arith.cmpi slt, %31, %32 : vector<16x128xi32>
    %cst_21 = arith.constant 0xFF800000 : f32
    %34 = vector.broadcast %cst_21 : f32 to vector<16x128xf32>
    %35 = arith.select %33, %30, %34 : vector<16x128xi1>, vector<16x128xf32>
    %cst_22 = arith.constant dense<0xFF800000> : vector<16xf32>
    %36 = vector.multi_reduction <maximumf>, %35, %cst_22 [1] : vector<16x128xf32> to vector<16xf32>
    %37 = vector.shape_cast %36 : vector<16xf32> to vector<16x1xf32>
    %38 = vector.broadcast %37 : vector<16x1xf32> to vector<16x128xf32>
    %39 = arith.cmpf oeq, %35, %38 : vector<16x128xf32>
    %c1073741824_i32 = arith.constant 1073741824 : i32
    %40 = vector.broadcast %c1073741824_i32 : i32 to vector<16x128xi32>
    %41 = arith.select %39, %31, %40 : vector<16x128xi1>, vector<16x128xi32>
    %cst_23 = arith.constant dense<2147483647> : vector<16xi32>
    %42 = vector.multi_reduction <minsi>, %41, %cst_23 [1] : vector<16x128xi32> to vector<16xi32>
    %43 = vector.shape_cast %42 : vector<16xi32> to vector<16x1xi32>
    %c127_i32 = arith.constant 127 : i32
    %44 = vector.broadcast %c127_i32 : i32 to vector<16x128xi32>
    %45 = arith.cmpi eq, %31, %44 : vector<16x128xi32>
    %46 = arith.sitofp %43 : vector<16x1xi32> to vector<16x1xf32>
    %47 = vector.shape_cast %46 : vector<16x1xf32> to vector<16x1xf32>
    %48 = vector.broadcast %47 : vector<16x1xf32> to vector<16x128xf32>
    %49 = arith.select %45, %48, %30 : vector<16x128xi1>, vector<16x128xf32>
    %50 = arith.truncf %49 : vector<16x128xf32> to vector<16x128xbf16>
    %c0_24 = arith.constant 0 : index
    %c0_25 = arith.constant 0 : index
    %51 = vector.load %arg4[%c0_24, %c0_25] : memref<16x128xbf16, #tpu.memory_space<vmem>>, vector<16x128xbf16>
    tpu.vector_store %arg4[%c0_24, %c0_25], %50 {strides = array<i32>} : memref<16x128xbf16, #tpu.memory_space<vmem>>, vector<16x128xbf16>,
    return
  }
  func.func @transform_0(%arg0: i32) -> (i32, i32) {
    %c0_i32 = arith.constant 0 : i32
    %c0_i32_0 = arith.constant 0 : i32
    return %arg0, %c0_i32 : i32, i32
  }
  func.func @transform_1(%arg0: i32) -> (i32, i32, i32) {
    %c0_i32 = arith.constant 0 : i32
    %c0_i32_0 = arith.constant 0 : i32
    %c0_i32_1 = arith.constant 0 : i32
    %c0_i32_2 = arith.constant 0 : i32
    return %c0_i32, %c0_i32_0, %c0_i32_1 : i32, i32, i32
  }
  func.func @transform_2(%arg0: i32) -> (i32, i32, i32) {
    %c0_i32 = arith.constant 0 : i32
    %c0_i32_0 = arith.constant 0 : i32
    %c0_i32_1 = arith.constant 0 : i32
    %c0_i32_2 = arith.constant 0 : i32
    return %c0_i32, %c0_i32_0, %c0_i32_1 : i32, i32, i32
  }
  func.func @transform_3(%arg0: i32) -> (i32, i32) {
    %c0_i32 = arith.constant 0 : i32
    %c0_i32_0 = arith.constant 0 : i32
    return %arg0, %c0_i32 : i32, i32
  }
}

</mosaic_0001>

<bundles_post_ra>
// kernel: dqn_forward.1
= control target key start
LH: loop header
LB: loop body
LE: loop exit
PB: predicated region body
PF: predicated region fallthrough
CT: control target
= control target key end

     0   :  { %8 = vsyncpa [#allocation3], 0  ;;  %s422_s15 = smov [#allocation2]   ;;  %s423_s17 = smov 64   ;;  %s466_s0 = inlined_call_operand.vmem [shape: f32[16,16], index: 0, kind: input, shape index: {}]   ;;  %s467_s1 = inlined_call_operand.hbm [shape: bf16[3,128,128], index: 1, kind: input, shape index: {}]   ;;  %s468_s2 = inlined_call_operand.vmem [shape: f32[3,1,128], index: 2, kind: input, shape index: {}]   ;;  %s469_s3 = inlined_call_operand.vmem [shape: bf16[16,128], index: 3, kind: output, shape index: {}]  }
   0x1   :  { %s15_s14 = sshll.u32 %s467_s1, 4  ;;  %s17_s16 = sshll.u32 %s422_s15, 4  ;;  %s16_s14 = int_to_ptr.hbm [resolvable:$true] %s15_s14  ;;  %s18_s16 = int_to_ptr.vmem [resolvable:$true] %s17_s16 }
   0x2   :  { %s424_s18 = smov 4  }
   0x3   :  { %23 = dma.hbm_to_vmem [thread:$0]  %s16_s14, 3072, %s18_s16, [#allocation3], %s423_s17, %s423_s17, %s424_s18  }
   0x4   :  { %420 = dma.done.wait [#allocation3], 3072  }
   0x5   :  { %421 = vsyncadd [#allocation3], 4294964224  ;;  %v368_v0 = vld [vmem:[#allocation2] sm:$0xff]  ;;  %v32_v2 = vld [vmem:[%s466_s0 + $0x8] sm:$0xff]  ;;  %vm46_vm0 = vcmask 130048   ;;  %v242_v36 = vlaneseq }
   0x6   :  { %v31_v1 = vld [vmem:[%s466_s0] sm:$0xff]  ;;  %v376_v4 = vld [vmem:[#allocation2 + $0x78] sm:$0xff]  ;;  %57 = vmatpush.bf16.msra.mxu0 %v368_v0  ;;  %v375_v5 = vld [vmem:[#allocation2 + $0x70] sm:$0xff] }
   0x7   :  { %v33_v3 = vpack.c.bf16 %v32_v2, %v31_v1  ;;  %137 = vmatpush.bf16.msra.mxu1 %v376_v4  ;;  %v374_v6 = vld [vmem:[#allocation2 + $0x68] sm:$0xff]  ;;  %v373_v7 = vld [vmem:[#allocation2 + $0x60] sm:$0xff]  ;;  %v372_v8 = vld [vmem:[#allocation2 + $0x58] sm:$0xff]  ;;  %v243_v39 = vand.u32 127, %v242_v36 }
   0x8   :  { %v371_v9 = vld [vmem:[#allocation2 + $0x50] sm:$0xff]  ;;  %v370_v10 = vld [vmem:[#allocation2 + $0x48] sm:$0xff]  ;;  %v369_v11 = vld [vmem:[#allocation2 + $0x40] sm:$0xff] }
   0x9   :  { %301 = vmatmul.msk.bf16.vlgmr.msra.gmra.mxu0 %vm46_vm0, %v33_v3  ;;  %v384_v12 = vld [vmem:[#allocation2 + $0xb8] sm:$0xff]  ;;  %v383_v13 = vld [vmem:[#allocation2 + $0xb0] sm:$0xff]  ;;  %v382_v14 = vld [vmem:[#allocation2 + $0xa8] sm:$0xff]  ;;  %vm244_vm1 = vcmp.lt.s32.totalorder %v243_v39, 4  ;;  %vm283_vm6 = vcmp.eq.s32.totalorder %v243_v39, 127 }
   0xa   :  { %224 = vmatpush.bf16.msra.mxu2 %v384_v12  ;;  %v381_v15 = vld [vmem:[#allocation2 + $0xa0] sm:$0xff]  ;;  %v380_v24 = vld [vmem:[#allocation2 + $0x98] sm:$0xff]  ;;  %v379_v25 = vld [vmem:[#allocation2 + $0x90] sm:$0xff] }
   0xb   :  { %138 = vmatpush.bf16.msra.mxu1 %v375_v5  ;;  %v393_v17 = vld [vmem:[%s468_s2] ss:$0 sm:$0xff]  ;;  %v378_v26 = vld [vmem:[#allocation2 + $0x88] sm:$0xff]  ;;  %v394_v29 = vld [vmem:[%s468_s2 + $0x1] ss:$0 sm:$0xff] }
   0xc   :  { %v377_v27 = vld [vmem:[#allocation2 + $0x80] sm:$0xff] }
   0xd   :  { %v395_v37 = vld [vmem:[%s468_s2 + $0x2] ss:$0 sm:$0xff] }
   0xe   :  { %225 = vmatpush.bf16.msra.mxu2 %v383_v13 }
   0xf   :  { %139 = vmatpush.bf16.msra.mxu1 %v374_v6 }
  0x12   :  { %226 = vmatpush.bf16.msra.mxu2 %v382_v14 }
  0x13   :  { %140 = vmatpush.bf16.msra.mxu1 %v373_v7 }
  0x16   :  { %227 = vmatpush.bf16.msra.mxu2 %v381_v15 }
  0x17   :  { %141 = vmatpush.bf16.msra.mxu1 %v372_v8 }
  0x1a   :  { %228 = vmatpush.bf16.msra.mxu2 %v380_v24 }
  0x1b   :  { %142 = vmatpush.bf16.msra.mxu1 %v371_v9 }
  0x1e   :  { %229 = vmatpush.bf16.msra.mxu2 %v379_v25 }
  0x1f   :  { %143 = vmatpush.bf16.msra.mxu1 %v370_v10 }
  0x22   :  { %230 = vmatpush.bf16.msra.mxu2 %v378_v26 }
  0x23   :  { %144 = vmatpush.bf16.msra.mxu1 %v369_v11 }
  0x26   :  { %231 = vmatpush.bf16.msra.mxu2 %v377_v27 }
  0x86   :  { %v59_v16 = vpop.f32.mrf.mxu0 }
  0x87   :  { %v60_v18 = vadd.f32 %v393_v17, %v59_v16 }
  0x89   :  { %v64_v21 = vmax.f32 %v60_v18, 0.0 }
  0x8e   :  { %v61_v19 = vpop.f32.mrf.mxu0 }
  0x8f   :  { %v62_v20 = vadd.f32 %v393_v17, %v61_v19 }
  0x91   :  { %v65_v22 = vmax.f32 %v62_v20, 0.0 }
  0x93   :  { %v66_v23 = vpack.c.bf16 %v65_v22, %v64_v21 }
  0x95   :  { %145 = vmatmul.bf16.vlgmr.msra.gmra.mxu1 %v66_v23 }
 0x112   :  { %v146_v28 = vpop.f32.mrf.mxu1 }
 0x113   :  { %v147_v30 = vadd.f32 %v394_v29, %v146_v28 }
 0x115   :  { %v151_v33 = vmax.f32 %v147_v30, 0.0 }
 0x11a   :  { %v148_v31 = vpop.f32.mrf.mxu1 }
 0x11b   :  { %v149_v32 = vadd.f32 %v394_v29, %v148_v31 }
 0x11d   :  { %v152_v34 = vmax.f32 %v149_v32, 0.0 }
 0x11f   :  { %v153_v35 = vpack.c.bf16 %v152_v34, %v151_v33 }
 0x121   :  { %232 = vmatmul.bf16.vlgmr.msra.gmra.mxu2 %v153_v35 }
 0x1a4   :  { %v233_v38 = vpop.f32.mrf.mxu2 }
 0x1a5   :  { %v234_v40 = vadd.f32 %v395_v37, %v233_v38 }
 0x1a7   :  { %v238_v41 = vpack.c.bf16 %v234_v40, %v234_v40 }
 0x1a9   :  { %v240_v42 = vunpack.c.l.bf16 %v238_v41 }
 0x1ab   :  { %v245_v43 = vsel %vm244_vm1, %v240_v42, -inf }
 0x1ac   :  { %v235_v44 = vpop.f32.mrf.mxu2  ;;  %247 = vmax.xlane.f32.xlu0 %v245_v43 }
 0x1ad   :  { %v236_v45 = vadd.f32 %v395_v37, %v235_v44 }
 0x1af   :  { %v239_v46 = vpack.c.bf16 %v236_v45, %v236_v45 }
 0x1b1   :  { %v241_v47 = vunpack.c.l.bf16 %v239_v46 }
 0x1b3   :  { %v246_v48 = vsel %vm244_vm1, %v241_v47, -inf }
 0x1b4   :  { %249 = vmax.xlane.f32.xlu0 %v246_v48 }
 0x21f   :  { %v248_v49 = vpop.xlane.xlu0 %247 }
 0x220   :  { %vm251_vm2 = vcmp.eq.f32.partialorder %v245_v43, %v248_v49 }
 0x221   :  { %v253_v50 = vsel %vm251_vm2, %v243_v39, 1073741824 }
 0x222   :  { %v256_v51 = vshra.s32 %v253_v50, 16  ;;  %v255_v57 = vand.u32 65535, %v253_v50 }
 0x224   :  { %v258_v52 = vcvt.s32.f32 %v256_v51  ;;  %v257_v59 = vcvt.s32.f32 %v255_v57 }
 0x226   :  { %259 = vmin.xlane.f32.xlu1 %v258_v52 }
 0x227   :  { %v250_v53 = vpop.xlane.xlu0 %249 }
 0x228   :  { %vm252_vm3 = vcmp.eq.f32.partialorder %v246_v48, %v250_v53 }
 0x229   :  { %v254_v54 = vsel %vm252_vm3, %v243_v39, 1073741824 }
 0x22a   :  { %v270_v55 = vshra.s32 %v254_v54, 16  ;;  %v269_v61 = vand.u32 65535, %v254_v54 }
 0x22c   :  { %v272_v56 = vcvt.s32.f32 %v270_v55  ;;  %v271_v63 = vcvt.s32.f32 %v269_v61 }
 0x22e   :  { %273 = vmin.xlane.f32.xlu1 %v272_v56 }
 0x299   :  { %v260_v58 = vpop.xlane.xlu1 %259 }
 0x29a   :  { %vm261_vm4 = vcmp.eq.f32.partialorder %v258_v52, %v260_v58  ;;  %v266_v2 = vcvt.f32.s32 %v260_v58 }
 0x29b   :  { %v262_v60 = vsel %vm261_vm4, %v257_v59, inf }
 0x29c   :  { %263 = vmin.xlane.f32.xlu2 %v262_v60  ;;  %v267_v4 = vshll.u32 %v266_v2, 16 }
 0x2a1   :  { %v274_v62 = vpop.xlane.xlu1 %273 }
 0x2a2   :  { %vm275_vm5 = vcmp.eq.f32.partialorder %v272_v56, %v274_v62  ;;  %v280_v5 = vcvt.f32.s32 %v274_v62 }
 0x2a3   :  { %v276_v0 = vsel %vm275_vm5, %v271_v63, inf }
 0x2a4   :  { %277 = vmin.xlane.f32.xlu2 %v276_v0  ;;  %v281_v8 = vshll.u32 %v280_v5, 16 }
 0x30f   :  { %v264_v1 = vpop.xlane.xlu2 %263 }
 0x310   :  { %v265_v3 = vcvt.f32.s32 %v264_v1 }
 0x312   :  { %v268_v6 = vadd.s32 %v267_v4, %v265_v3 }
 0x314   :  { %v284_v10 = vcvt.s32.f32 %v268_v6 }
 0x316   :  { %v286_v13 = vsel %vm283_vm6, %v284_v10, %v240_v42 }
 0x317   :  { %v278_v7 = vpop.xlane.xlu2 %277 }
 0x318   :  { %v279_v9 = vcvt.f32.s32 %v278_v7 }
 0x31a   :  { %v282_v11 = vadd.s32 %v281_v8, %v279_v9 }
 0x31c   :  { %v285_v12 = vcvt.s32.f32 %v282_v11 }
 0x31e   :  { %v287_v14 = vsel %vm283_vm6, %v285_v12, %v241_v47 }
 0x31f   :  { %v388_v15 = vpack.c.bf16 %v287_v14, %v286_v13 }
 0x321   :  { %389 = vst [vmem:[%s469_s3] sm:$0xff] %v388_v15  }
 0x322   :  { %296 = vsyncpa [#allocation3], 1 }

</bundles_post_ra>
